<compile_context>
chip_gen: v7x
topology: tpu7x:2x2x1
jax: 0.10.0
libtpu: 0.0.40
codegen_flags: <defaults>
</compile_context>

<pallas_src>
import math

import jax
import jax.numpy as jnp
from jax.experimental import pallas as pl
from jax.experimental.pallas import tpu as pltpu


def _fill_kernel(scale_ref, o_ref):
    # scale_ref: SMEM scalar-prefetch ref, shape (1,), f32, already exp/clamped.
    # o_ref:     VMEM output tile — pure broadcast store, no input read.
    o_ref[...] = jnp.full(o_ref.shape, scale_ref[0], dtype=o_ref.dtype)


def _round_up(a, b):
    return -(-a // b) * b


def learned_variance_forward(x, inv_std_param):
    """Pallas implementation of LearnedVariance.forward.

    x:              any-shape array (only shape/dtype are used)
    inv_std_param:  scalar float (the learned `_inv_std` parameter)
    """
    orig_shape = x.shape
    orig_dtype = x.dtype
    total = int(math.prod(orig_shape))

    # exp/clamp hoisted out of the kernel: a single scalar, computed once.
    scale = jnp.clip(
        jnp.exp(jnp.asarray(inv_std_param, jnp.float32) * 10.0), 1e-6, 1e6
    )

    if total == 0:
        return jnp.full(orig_shape, scale, dtype=orig_dtype)

    LANE = 128
    itemsize = jnp.dtype(orig_dtype).itemsize
    # Sublane packing: 8 rows for 4-byte dtypes, 16 for bf16/fp16, 32 for int8/fp8.
    sub = max(8, 32 // max(itemsize, 1))

    # Wide lane-dense output slab: last dim up to 2048 (= 16*128) lanes,
    # but no wider than needed for tiny inputs.
    W = min(16 * LANE, _round_up(total, LANE))
    rows_needed = -(-total // W)

    # ~4 MiB per block => 8 MiB double-buffered output: comfortably inside
    # v7x's 32 MiB scoped VMEM default while large enough to sit at the
    # HBM-store roofline on v5e/v6e.  Large outputs get many grid steps,
    # which the "parallel" axis shards across v7x's 2 TensorCores.
    target_block_bytes = 4 << 20
    cap_rows = max(sub, (target_block_bytes // (W * itemsize)) // sub * sub)

    if rows_needed <= cap_rows:
        block_rows = rows_needed  # single full-extent block (no (8,128) issue)
    else:
        block_rows = cap_rows     # multiple of `sub`; W is a multiple of 128
    rows = _round_up(rows_needed, block_rows)
    grid = (rows // block_rows,)

    scale_arr = jnp.reshape(scale, (1,))

    out2d = pl.pallas_call(
        _fill_kernel,
        out_shape=jax.ShapeDtypeStruct((rows, W), orig_dtype),
        grid_spec=pltpu.PrefetchScalarGridSpec(
            num_scalar_prefetch=1,
            grid=grid,
            in_specs=[],  # x is never read -> no tensor inputs at all
            out_specs=pl.BlockSpec((block_rows, W), lambda i, s: (i, 0)),
        ),
        compiler_params=pltpu.CompilerParams(
            dimension_semantics=("parallel",),
        ),
    )(scale_arr)

    if rows * W == total:
        # No padding was introduced: contiguous reshape only (no copy).
        return out2d.reshape(orig_shape)
    # Padded slab: slice away the tail, then reshape to the original shape.
    return out2d.reshape(-1)[:total].reshape(orig_shape)


def learned_variance_ref(x, inv_std_param):
    """Pure-JAX reference mirroring the PyTorch module."""
    s = jnp.clip(
        jnp.exp(jnp.asarray(inv_std_param, jnp.float32) * 10.0), 1e-6, 1e6
    )
    return jnp.ones_like(x) * s.astype(x.dtype)


if __name__ == "__main__":
    key = jax.random.PRNGKey(0)
    init_val = 0.3  # deterministic _inv_std parameter value

    # Example 1: NCHW activations (exercises the no-padding path).
    x1 = jax.random.normal(key, (2, 4, 16, 16), dtype=jnp.float32)
    out1 = jax.block_until_ready(learned_variance_forward(x1, init_val))
    ref1 = learned_variance_ref(x1, init_val)
    assert out1.shape == x1.shape and out1.dtype == x1.dtype
    assert jnp.allclose(out1, ref1, rtol=1e-6, atol=1e-6), "mismatch vs reference"

    # Example 2: odd-sized input (exercises the padded/sliced path).
    x2 = jax.random.normal(key, (3, 5, 7), dtype=jnp.float32)
    out2 = jax.block_until_ready(learned_variance_forward(x2, init_val))
    ref2 = learned_variance_ref(x2, init_val)
    assert out2.shape == x2.shape and out2.dtype == x2.dtype
    assert jnp.allclose(out2, ref2, rtol=1e-6, atol=1e-6), "mismatch vs reference"

    print("KERNEL_OK")
</pallas_src>

<mosaic_0001>
module attributes {stable_mosaic.version = 11 : i64} {
  func.func @_fill_kernel(%arg0: i32, %arg1: memref<1xf32, #tpu.memory_space<smem>>, %arg2: memref<1x2048xf32, #tpu.memory_space<vmem>>) attributes {dimension_semantics = [#tpu.dimension_semantics<parallel>], iteration_bounds = array<i64: 1>, scalar_prefetch = 1 : i64, scratch_operands = 0 : i64, tpu.core_type = #tpu.core_type<tc>, window_params = [{transform_indices = @transform_0, window_bounds = array<i64: 1, 2048>}]} {
    %c0 = arith.constant 0 : index
    %0 = memref.load %arg1[%c0] : memref<1xf32, #tpu.memory_space<smem>>
    %1 = vector.broadcast %0 : f32 to vector<1x2048xf32>
    %c0_0 = arith.constant 0 : index
    %c0_1 = arith.constant 0 : index
    %2 = vector.load %arg2[%c0_0, %c0_1] : memref<1x2048xf32, #tpu.memory_space<vmem>>, vector<1x2048xf32>
    tpu.vector_store %arg2[%c0_0, %c0_1], %1 {strides = array<i32>} : memref<1x2048xf32, #tpu.memory_space<vmem>>, vector<1x2048xf32>,
    return
  }
  func.func @transform_0(%arg0: i32, %arg1: memref<1xf32, #tpu.memory_space<smem>>) -> (i32, i32) {
    %c0_i32 = arith.constant 0 : i32
    %c0_i32_0 = arith.constant 0 : i32
    return %arg0, %c0_i32 : i32, i32
  }
}

</mosaic_0001>

<bundles_post_ra>
// kernel: tpu_custom_call.1
= control target key start
LH: loop header
LB: loop body
LE: loop exit
PB: predicated region body
PF: predicated region fallthrough
CT: control target
= control target key end

     0   :  { %s77_s0 = inlined_call_operand.<no memory space> [shape: f32[1], index: 0, kind: input, shape index: {}]   ;;  %s78_s1 = inlined_call_operand.hbm [shape: f32[1,2048], index: 1, kind: output, shape index: {}]  }
   0x1   :  { %v9_v0 = vstv %s77_s0 }
   0x2   :  { %7 = vsyncpa [#allocation5], 0  ;;  %10 = vst [vmem:[#allocation4] sm:$0xff] %v9_v0  ;;  %s51_s8 = smov [#allocation4]  }
   0x3   :  { %11 = vst [vmem:[#allocation4 + $0x8] sm:$0xff] %v9_v0  ;;  %s18_s9 = sshll.u32 %s51_s8, 4  ;;  %s19_s9 = int_to_ptr.vmem [resolvable:$true] %s18_s9 }
   0x4   :  { %s27_s10 = scalar_lea.vmem %s19_s9, 256  ;;  %p32_p1 = scmp.lt.s32.totalorder %s19_s9, %s19_s9 }
   0x5   :  { %p28_p0 = scmp.ne.s32.totalorder %s19_s9, %s27_s10  ;;  %p33_p2 = scmp.lt.s32.totalorder %s27_s10, %s27_s10 }
   0x7   :  { %p34_p3 = por %p33_p2, %p32_p1 }
   0x9   :  { %p35_p4 = pnand %p34_p3, %p28_p0 }
   0xb   :  { %38 = shalt.err (!%p35_p4)
}
   0xc   :  { %s39_s13 = scalar_lea.hbm %s78_s1, 256 }
   0xd   :  { %p40_p5 = scmp.ne.s32.totalorder %s78_s1, %s39_s13  ;;  %p43_p6 = scmp.lt.u32.totalorder %s39_s13, %s78_s1 }
   0xf   :  { %p45_p7 = pnand %p43_p6, %p40_p5 }
  0x11   :  { %48 = shalt.err (!%p45_p7)
}
  0x12   :  { %21 = dma.vmem_to_hbm [thread:$0]  %s19_s9, 256, %s78_s1, [#allocation5]  }
  0x13   :  { %49 = dma.done.wait [#allocation5], 256  }
  0x14   :  { %50 = vsyncadd [#allocation5], 4294967040 }
  0x15   :  { %25 = vsyncpa [#allocation5], 1 }

</bundles_post_ra>
